<compile_context>
chip_gen: v5e
topology: v5e:2x2
jax: 0.10.0
libtpu: 0.0.40
codegen_flags: <defaults>
</compile_context>

<pallas_src>
import functools

import jax
import jax.numpy as jnp
from jax import lax
from jax.experimental import pallas as pl
from jax.experimental.pallas import tpu as pltpu

BN_EPS = 1e-5
LANE = 128
SUBLANE = 8
VMEM_LIMIT_BYTES = 32 * 1024 * 1024  # explicit, with headroom; fits v7x's 64 MiB VMEM


def _round_up(n, m):
    return ((n + m - 1) // m) * m


def _pad2d(a, rows, cols, dtype):
    """Zero-pad a 2-D array to (rows, cols) and cast to dtype."""
    out = jnp.zeros((rows, cols), dtype)
    return out.at[:a.shape[0], :a.shape[1]].set(a.astype(dtype))


def _mlp_tail(h1, w2_ref, b2_ref, w3_ref, b3_ref, w4_ref, b4_ref, w5_ref, b5_ref):
    """fc2..fc4 + ReLU, fc5 + tanh. MXU inputs cast to the weight dtype,
    f32 accumulation, all elementwise math in f32 (v5e-safe). All hidden widths
    are padded to 128 lanes, so every matmul is full-lane and unmasked."""
    wdt = w2_ref.dtype
    h2 = jnp.maximum(
        jnp.dot(h1.astype(wdt), w2_ref[...], preferred_element_type=jnp.float32)
        + b2_ref[...], 0.0)
    h3 = jnp.maximum(
        jnp.dot(h2.astype(wdt), w3_ref[...], preferred_element_type=jnp.float32)
        + b3_ref[...], 0.0)
    h4 = jnp.maximum(
        jnp.dot(h3.astype(wdt), w4_ref[...], preferred_element_type=jnp.float32)
        + b4_ref[...], 0.0)
    return jnp.tanh(
        jnp.dot(h4.astype(wdt), w5_ref[...], preferred_element_type=jnp.float32)
        + b5_ref[...])


def _bn_stats_kernel(x_ref, w1_ref, b1_ref, stats_ref, *, batch, block_b, fc1p):
    """Per-tile partial (sum, sum-of-squares) of relu(fc1(x)) over the batch,
    stored lane-concatenated as [sum | sumsq] in one (1, 1, 2*fc1p) block."""
    wdt = w1_ref.dtype
    h1 = jnp.maximum(
        jnp.dot(x_ref[...].astype(wdt), w1_ref[...],
                preferred_element_type=jnp.float32) + b1_ref[...], 0.0)
    # Mask batch-padding rows so they do not pollute the statistics.
    row = (lax.broadcasted_iota(jnp.int32, (block_b, 1), 0)
           + pl.program_id(0) * block_b)
    mask = (row < batch).astype(jnp.float32)
    h1 = h1 * mask
    stats_ref[:, :, :fc1p] = jnp.sum(h1, axis=0, keepdims=True)[None]
    stats_ref[:, :, fc1p:] = jnp.sum(h1 * h1, axis=0, keepdims=True)[None]


def _actor_tiled_kernel(x_ref, w1_ref, b1_ref, scale_ref, shift_ref,
                        w2_ref, b2_ref, w3_ref, b3_ref, w4_ref, b4_ref,
                        w5_ref, b5_ref, out_ref):
    """Main pass: recompute fc1, apply folded BN affine, fc2..fc5 + tanh."""
    wdt = w1_ref.dtype
    h1 = jnp.maximum(
        jnp.dot(x_ref[...].astype(wdt), w1_ref[...],
                preferred_element_type=jnp.float32) + b1_ref[...], 0.0)
    h1 = h1 * scale_ref[...] + shift_ref[...]   # BN folded into scale/shift
    y = _mlp_tail(h1, w2_ref, b2_ref, w3_ref, b3_ref, w4_ref, b4_ref, w5_ref, b5_ref)
    out_ref[...] = y.astype(out_ref.dtype)


def _actor_fused_kernel(x_ref, w1_ref, b1_ref, gamma_ref, beta_ref,
                        w2_ref, b2_ref, w3_ref, b3_ref, w4_ref, b4_ref,
                        w5_ref, b5_ref, out_ref, *, batch):
    """Single-call fused path: whole batch resident, BN computed in-kernel."""
    wdt = w1_ref.dtype
    h1 = jnp.maximum(
        jnp.dot(x_ref[...].astype(wdt), w1_ref[...],
                preferred_element_type=jnp.float32) + b1_ref[...], 0.0)
    rows = x_ref.shape[0]
    row = lax.broadcasted_iota(jnp.int32, (rows, 1), 0)
    mask = (row < batch).astype(jnp.float32)
    h1m = h1 * mask
    inv_n = 1.0 / batch
    mean = jnp.sum(h1m, axis=0, keepdims=True) * inv_n
    # One-pass variance E[x^2]-E[x]^2, clamped at 0 against f32 cancellation.
    var = jnp.maximum(jnp.sum(h1m * h1m, axis=0, keepdims=True) * inv_n
                      - mean * mean, 0.0)
    scale = gamma_ref[...] * lax.rsqrt(var + BN_EPS)   # padded gamma=0 -> col stays 0
    h1 = (h1 - mean) * scale + beta_ref[...]
    y = _mlp_tail(h1, w2_ref, b2_ref, w3_ref, b3_ref, w4_ref, b4_ref, w5_ref, b5_ref)
    out_ref[...] = y.astype(out_ref.dtype)


def actor_forward(x, params, *, block_b=4096, weights_dtype=jnp.bfloat16):
    """Actor forward pass (PyTorch training-mode BatchNorm semantics).

    params: dict with w1..w5 (in_features, out_features), b1..b5 (1, out_features),
            gamma/beta (1, fc1_units), float32.
    weights_dtype: MXU-side dtype for weights/activations at the matmul boundary
                   (default bf16; accumulation and all elementwise math stay f32).
                   Pass jnp.float32 for full-precision matmuls.
    """
    B, state_size = x.shape
    fc1_units = params["w1"].shape[1]
    fc2_units = params["w2"].shape[1]
    fc3_units = params["w3"].shape[1]
    fc4_units = params["w4"].shape[1]
    action_size = params["w5"].shape[1]

    wdt = jnp.dtype(weights_dtype) if weights_dtype is not None else params["w1"].dtype

    # Pad every layer's output width to a multiple of 128 lanes. Padded columns
    # are exact zeros end-to-end (relu(0)=0; BN gamma/beta padded with 0), so
    # the unpadded slice returned below is unchanged.
    fc1p = _round_up(fc1_units, LANE)
    fc2p = _round_up(fc2_units, LANE)
    fc3p = _round_up(fc3_units, LANE)
    fc4p = _round_up(fc4_units, LANE)
    outp = _round_up(action_size, LANE)

    w1p = _pad2d(params["w1"], state_size, fc1p, wdt)
    w2p = _pad2d(params["w2"], fc1p, fc2p, wdt)
    w3p = _pad2d(params["w3"], fc2p, fc3p, wdt)
    w4p = _pad2d(params["w4"], fc3p, fc4p, wdt)
    w5p = _pad2d(params["w5"], fc4p, outp, wdt)
    b1p = _pad2d(params["b1"], 1, fc1p, jnp.float32)
    b2p = _pad2d(params["b2"], 1, fc2p, jnp.float32)
    b3p = _pad2d(params["b3"], 1, fc3p, jnp.float32)
    b4p = _pad2d(params["b4"], 1, fc4p, jnp.float32)
    b5p = _pad2d(params["b5"], 1, outp, jnp.float32)
    gammap = _pad2d(params["gamma"], 1, fc1p, jnp.float32)
    betap = _pad2d(params["beta"], 1, fc1p, jnp.float32)

    # Batch tiling: sublane-aligned tile, batch padded to a tile multiple.
    # Large default block_b => most batches take the single fused call; bigger
    # batches get >=2 tiles and a "parallel" grid (v7x megacore sharding).
    block = _round_up(min(block_b, _round_up(B, SUBLANE)), SUBLANE)
    padded_b = _round_up(B, block)
    n_tiles = padded_b // block
    xp = x.astype(jnp.float32)
    if padded_b != B:
        xp = jnp.pad(xp, ((0, padded_b - B), (0, 0)))

    weight_bytes = sum(int(a.size) * a.dtype.itemsize for a in
                       (w1p, w2p, w3p, w4p, w5p,
                        b1p, b2p, b3p, b4p, b5p, gammap, betap))
    flops_per_row = 2 * (state_size * fc1p + fc1p * fc2p + fc2p * fc3p
                         + fc3p * fc4p + fc4p * outp)

    cparams_grid = pltpu.CompilerParams(
        dimension_semantics=("parallel",),          # shard batch tiles across TCs
        vmem_limit_bytes=VMEM_LIMIT_BYTES)
    cparams_nogrid = pltpu.CompilerParams(vmem_limit_bytes=VMEM_LIMIT_BYTES)

    if n_tiles == 1:
        # Single-call fused path: one launch, BN over the resident batch.
        vmem = pl.BlockSpec(memory_space=pltpu.MemorySpace.VMEM)
        args = (xp, w1p, b1p, gammap, betap,
                w2p, b2p, w3p, b3p, w4p, b4p, w5p, b5p)
        ce = pl.CostEstimate(
            flops=int(padded_b * flops_per_row),
            transcendentals=int(padded_b * outp + fc1p),
            bytes_accessed=int(xp.nbytes) + weight_bytes + padded_b * outp * 4)
        out = pl.pallas_call(
            functools.partial(_actor_fused_kernel, batch=B),
            out_shape=jax.ShapeDtypeStruct((padded_b, outp), jnp.float32),
            in_specs=[vmem] * len(args),
            out_specs=vmem,
            compiler_params=cparams_nogrid,
            cost_estimate=ce,
        )(*args)
        return out[:B, :action_size]

    def full(a):  # whole-array block, constant index -> resident across the grid
        return pl.BlockSpec(a.shape, lambda i, _n=a.ndim: (0,) * _n)

    # ---- Pass 1: per-tile partial [sum | sum-of-squares] of relu(fc1(x)) ----
    stats_ce = pl.CostEstimate(
        flops=int(padded_b * 2 * state_size * fc1p),
        transcendentals=0,
        bytes_accessed=int(xp.nbytes) + int(w1p.nbytes) + int(b1p.nbytes)
        + n_tiles * 2 * fc1p * 4)
    stats = pl.pallas_call(
        functools.partial(_bn_stats_kernel, batch=B, block_b=block, fc1p=fc1p),
        out_shape=jax.ShapeDtypeStruct((n_tiles, 1, 2 * fc1p), jnp.float32),
        grid=(n_tiles,),
        in_specs=[
            pl.BlockSpec((block, state_size), lambda i: (i, 0)),
            full(w1p),
            full(b1p),
        ],
        out_specs=pl.BlockSpec((1, 1, 2 * fc1p), lambda i: (i, 0, 0)),
        compiler_params=cparams_grid,
        cost_estimate=stats_ce,
    )(xp, w1p, b1p)

    # Combine tile partials -> folded BN affine (tiny, plain JAX between calls).
    ssum = jnp.sum(stats[:, 0, :fc1p], axis=0, keepdims=True)
    ssq = jnp.sum(stats[:, 0, fc1p:], axis=0, keepdims=True)
    mean = ssum / B
    var = jnp.maximum(ssq / B - mean * mean, 0.0)    # biased variance, clamped
    scale = gammap * lax.rsqrt(var + BN_EPS)         # padded gamma=0 -> scale=0
    shift = betap - mean * scale

    # ---- Pass 2: recompute fc1, apply folded BN, fc2..fc5 + tanh ----
    args = (xp, w1p, b1p, scale, shift,
            w2p, b2p, w3p, b3p, w4p, b4p, w5p, b5p)
    in_specs = [pl.BlockSpec((block, state_size), lambda i: (i, 0))]
    in_specs += [full(a) for a in args[1:]]
    main_ce = pl.CostEstimate(
        flops=int(padded_b * flops_per_row),
        transcendentals=int(padded_b * outp),
        bytes_accessed=int(xp.nbytes) + weight_bytes + padded_b * outp * 4)
    out = pl.pallas_call(
        _actor_tiled_kernel,
        out_shape=jax.ShapeDtypeStruct((padded_b, outp), jnp.float32),
        grid=(n_tiles,),
        in_specs=in_specs,
        out_specs=pl.BlockSpec((block, outp), lambda i: (i, 0)),
        compiler_params=cparams_grid,
        cost_estimate=main_ce,
    )(*args)
    return out[:B, :action_size]


def init_params(key, state_size, action_size,
                fc1_units=128, fc2_units=64, fc3_units=32, fc4_units=16):
    """Deterministic synthetic init (PyTorch-Linear-style uniform fan-in bounds)."""
    dims = [(state_size, fc1_units), (fc1_units, fc2_units),
            (fc2_units, fc3_units), (fc3_units, fc4_units),
            (fc4_units, action_size)]
    params = {}
    for i, (fan_in, fan_out) in enumerate(dims, start=1):
        key, kw, kb = jax.random.split(key, 3)
        bound = 1.0 / (fan_in ** 0.5)
        params[f"w{i}"] = jax.random.uniform(
            kw, (fan_in, fan_out), jnp.float32, -bound, bound)
        params[f"b{i}"] = jax.random.uniform(
            kb, (1, fan_out), jnp.float32, -bound, bound)
    params["gamma"] = jnp.ones((1, fc1_units), jnp.float32)
    params["beta"] = jnp.zeros((1, fc1_units), jnp.float32)
    return params


def reference_forward(x, params):
    """Pure-JAX reference (full f32 matmul precision), matches PyTorch train-mode BN."""
    p = lax.Precision.HIGHEST
    h1 = jnp.maximum(jnp.dot(x, params["w1"], precision=p) + params["b1"], 0.0)
    mean = jnp.mean(h1, axis=0, keepdims=True)
    var = jnp.mean((h1 - mean) ** 2, axis=0, keepdims=True)
    h1 = (h1 - mean) / jnp.sqrt(var + BN_EPS) * params["gamma"] + params["beta"]
    h2 = jnp.maximum(jnp.dot(h1, params["w2"], precision=p) + params["b2"], 0.0)
    h3 = jnp.maximum(jnp.dot(h2, params["w3"], precision=p) + params["b3"], 0.0)
    h4 = jnp.maximum(jnp.dot(h3, params["w4"], precision=p) + params["b4"], 0.0)
    return jnp.tanh(jnp.dot(h4, params["w5"], precision=p) + params["b5"])


if __name__ == "__main__":
    state_size, action_size = 32, 4
    key = jax.random.PRNGKey(0)
    key, kx1, kx2 = jax.random.split(key, 3)
    params = init_params(key, state_size, action_size)

    # Small batch -> fused single-call path (default bf16 MXU boundary).
    x_small = jax.random.normal(kx1, (8, state_size), jnp.float32)
    ref_small = reference_forward(x_small, params)
    out_small = jax.block_until_ready(actor_forward(x_small, params))
    assert out_small.shape == (8, action_size)
    assert jnp.allclose(out_small, ref_small, atol=3e-2, rtol=3e-2), \
        "fused bf16 path mismatch vs reference"

    # Same batch, full f32 MXU path -> tight tolerance.
    out_small_f32 = jax.block_until_ready(
        actor_forward(x_small, params, weights_dtype=jnp.float32))
    assert jnp.allclose(out_small_f32, ref_small, atol=1e-4, rtol=1e-4), \
        "fused f32 path mismatch vs reference"

    # Larger batch with small block_b to exercise the tiled two-pass path (2 tiles).
    x_big = jax.random.normal(kx2, (512, state_size), jnp.float32)
    ref_big = reference_forward(x_big, params)
    out_big_f32 = jax.block_until_ready(
        actor_forward(x_big, params, block_b=256, weights_dtype=jnp.float32))
    assert out_big_f32.shape == (512, action_size)
    assert jnp.allclose(out_big_f32, ref_big, atol=1e-4, rtol=1e-4), \
        "tiled f32 path mismatch vs reference"

    out_big_bf16 = jax.block_until_ready(
        actor_forward(x_big, params, block_b=256))
    assert jnp.allclose(out_big_bf16, ref_big, atol=3e-2, rtol=3e-2), \
        "tiled bf16 path mismatch vs reference"

    # Default block_b (4096): 512 rows fit in one tile -> single fused launch.
    out_big_def = jax.block_until_ready(actor_forward(x_big, params))
    assert jnp.allclose(out_big_def, ref_big, atol=3e-2, rtol=3e-2), \
        "default (fused, bf16) path mismatch vs reference"

    print("KERNEL_OK")
</pallas_src>

<mosaic_0001>
module attributes {stable_mosaic.version = 11 : i64} {
  func.func @_actor_fused_kernel(%arg0: memref<8x32xf32, #tpu.memory_space<vmem>>, %arg1: memref<32x128xbf16, #tpu.memory_space<vmem>>, %arg2: memref<1x128xf32, #tpu.memory_space<vmem>>, %arg3: memref<1x128xf32, #tpu.memory_space<vmem>>, %arg4: memref<1x128xf32, #tpu.memory_space<vmem>>, %arg5: memref<128x128xbf16, #tpu.memory_space<vmem>>, %arg6: memref<1x128xf32, #tpu.memory_space<vmem>>, %arg7: memref<128x128xbf16, #tpu.memory_space<vmem>>, %arg8: memref<1x128xf32, #tpu.memory_space<vmem>>, %arg9: memref<128x128xbf16, #tpu.memory_space<vmem>>, %arg10: memref<1x128xf32, #tpu.memory_space<vmem>>, %arg11: memref<128x128xbf16, #tpu.memory_space<vmem>>, %arg12: memref<1x128xf32, #tpu.memory_space<vmem>>, %arg13: memref<8x128xf32, #tpu.memory_space<vmem>>) attributes {dimension_semantics = [], scalar_prefetch = 0 : i64, scratch_operands = 0 : i64, tpu.core_type = #tpu.core_type<tc>} {
    %c0 = arith.constant 0 : index
    %c0_0 = arith.constant 0 : index
    %0 = vector.load %arg0[%c0, %c0_0] : memref<8x32xf32, #tpu.memory_space<vmem>>, vector<8x32xf32>
    %1 = arith.truncf %0 : vector<8x32xf32> to vector<8x32xbf16>
    %c0_1 = arith.constant 0 : index
    %c0_2 = arith.constant 0 : index
    %2 = vector.load %arg1[%c0_1, %c0_2] : memref<32x128xbf16, #tpu.memory_space<vmem>>, vector<32x128xbf16>
    %cst = arith.constant dense<0.000000e+00> : vector<8x128xf32>
    %3 = tpu.matmul %1, %2, %cst {dimension_numbers = #tpu.dot_dimension_numbers<[1], [0], [0], [1], [0, 0, 1, 1], [], []>} : vector<8x32xbf16>, vector<32x128xbf16>, vector<8x128xf32> -> vector<8x128xf32>
    %c0_3 = arith.constant 0 : index
    %c0_4 = arith.constant 0 : index
    %4 = vector.load %arg2[%c0_3, %c0_4] : memref<1x128xf32, #tpu.memory_space<vmem>>, vector<1x128xf32>
    %5 = vector.broadcast %4 : vector<1x128xf32> to vector<8x128xf32>
    %6 = arith.addf %3, %5 : vector<8x128xf32>
    %cst_5 = arith.constant 0.000000e+00 : f32
    %7 = vector.broadcast %cst_5 : f32 to vector<8x128xf32>
    %8 = arith.maximumf %6, %7 : vector<8x128xf32>
    %9 = tpu.iota {dimensions = array<i32: 0>} : vector<8x1xi32>
    %c8_i32 = arith.constant 8 : i32
    %10 = vector.broadcast %c8_i32 : i32 to vector<8x1xi32>
    %11 = arith.cmpi slt, %9, %10 : vector<8x1xi32>
    %12 = arith.extui %11 : vector<8x1xi1> to vector<8x1xi32>
    %13 = arith.sitofp %12 : vector<8x1xi32> to vector<8x1xf32>
    %14 = vector.broadcast %13 : vector<8x1xf32> to vector<8x128xf32>
    %15 = arith.mulf %8, %14 : vector<8x128xf32>
    %cst_6 = arith.constant dense<0.000000e+00> : vector<128xf32>
    %16 = vector.multi_reduction <add>, %15, %cst_6 [0] : vector<8x128xf32> to vector<128xf32>
    %17 = vector.shape_cast %16 : vector<128xf32> to vector<1x128xf32>
    %cst_7 = arith.constant 1.250000e-01 : f32
    %18 = vector.broadcast %cst_7 : f32 to vector<1x128xf32>
    %19 = arith.mulf %17, %18 : vector<1x128xf32>
    %20 = arith.mulf %15, %15 : vector<8x128xf32>
    %cst_8 = arith.constant dense<0.000000e+00> : vector<128xf32>
    %21 = vector.multi_reduction <add>, %20, %cst_8 [0] : vector<8x128xf32> to vector<128xf32>
    %22 = vector.shape_cast %21 : vector<128xf32> to vector<1x128xf32>
    %cst_9 = arith.constant 1.250000e-01 : f32
    %23 = vector.broadcast %cst_9 : f32 to vector<1x128xf32>
    %24 = arith.mulf %22, %23 : vector<1x128xf32>
    %25 = arith.mulf %19, %19 : vector<1x128xf32>
    %26 = arith.subf %24, %25 : vector<1x128xf32>
    %cst_10 = arith.constant 0.000000e+00 : f32
    %27 = vector.broadcast %cst_10 : f32 to vector<1x128xf32>
    %28 = arith.maximumf %26, %27 : vector<1x128xf32>
    %c0_11 = arith.constant 0 : index
    %c0_12 = arith.constant 0 : index
    %29 = vector.load %arg3[%c0_11, %c0_12] : memref<1x128xf32, #tpu.memory_space<vmem>>, vector<1x128xf32>
    %cst_13 = arith.constant 9.99999974E-6 : f32
    %30 = vector.broadcast %cst_13 : f32 to vector<1x128xf32>
    %31 = arith.addf %28, %30 : vector<1x128xf32>
    %32 = math.rsqrt %31 : vector<1x128xf32>
    %33 = arith.mulf %29, %32 : vector<1x128xf32>
    %34 = vector.broadcast %19 : vector<1x128xf32> to vector<8x128xf32>
    %35 = arith.subf %8, %34 : vector<8x128xf32>
    %36 = vector.broadcast %33 : vector<1x128xf32> to vector<8x128xf32>
    %37 = arith.mulf %35, %36 : vector<8x128xf32>
    %c0_14 = arith.constant 0 : index
    %c0_15 = arith.constant 0 : index
    %38 = vector.load %arg4[%c0_14, %c0_15] : memref<1x128xf32, #tpu.memory_space<vmem>>, vector<1x128xf32>
    %39 = vector.broadcast %38 : vector<1x128xf32> to vector<8x128xf32>
    %40 = arith.addf %37, %39 : vector<8x128xf32>
    %41 = arith.truncf %40 : vector<8x128xf32> to vector<8x128xbf16>
    %c0_16 = arith.constant 0 : index
    %c0_17 = arith.constant 0 : index
    %42 = vector.load %arg5[%c0_16, %c0_17] : memref<128x128xbf16, #tpu.memory_space<vmem>>, vector<128x128xbf16>
    %cst_18 = arith.constant dense<0.000000e+00> : vector<8x128xf32>
    %43 = tpu.matmul %41, %42, %cst_18 {dimension_numbers = #tpu.dot_dimension_numbers<[1], [0], [0], [1], [0, 0, 1, 1], [], []>} : vector<8x128xbf16>, vector<128x128xbf16>, vector<8x128xf32> -> vector<8x128xf32>
    %c0_19 = arith.constant 0 : index
    %c0_20 = arith.constant 0 : index
    %44 = vector.load %arg6[%c0_19, %c0_20] : memref<1x128xf32, #tpu.memory_space<vmem>>, vector<1x128xf32>
    %45 = vector.broadcast %44 : vector<1x128xf32> to vector<8x128xf32>
    %46 = arith.addf %43, %45 : vector<8x128xf32>
    %cst_21 = arith.constant 0.000000e+00 : f32
    %47 = vector.broadcast %cst_21 : f32 to vector<8x128xf32>
    %48 = arith.maximumf %46, %47 : vector<8x128xf32>
    %49 = arith.truncf %48 : vector<8x128xf32> to vector<8x128xbf16>
    %c0_22 = arith.constant 0 : index
    %c0_23 = arith.constant 0 : index
    %50 = vector.load %arg7[%c0_22, %c0_23] : memref<128x128xbf16, #tpu.memory_space<vmem>>, vector<128x128xbf16>
    %cst_24 = arith.constant dense<0.000000e+00> : vector<8x128xf32>
    %51 = tpu.matmul %49, %50, %cst_24 {dimension_numbers = #tpu.dot_dimension_numbers<[1], [0], [0], [1], [0, 0, 1, 1], [], []>} : vector<8x128xbf16>, vector<128x128xbf16>, vector<8x128xf32> -> vector<8x128xf32>
    %c0_25 = arith.constant 0 : index
    %c0_26 = arith.constant 0 : index
    %52 = vector.load %arg8[%c0_25, %c0_26] : memref<1x128xf32, #tpu.memory_space<vmem>>, vector<1x128xf32>
    %53 = vector.broadcast %52 : vector<1x128xf32> to vector<8x128xf32>
    %54 = arith.addf %51, %53 : vector<8x128xf32>
    %cst_27 = arith.constant 0.000000e+00 : f32
    %55 = vector.broadcast %cst_27 : f32 to vector<8x128xf32>
    %56 = arith.maximumf %54, %55 : vector<8x128xf32>
    %57 = arith.truncf %56 : vector<8x128xf32> to vector<8x128xbf16>
    %c0_28 = arith.constant 0 : index
    %c0_29 = arith.constant 0 : index
    %58 = vector.load %arg9[%c0_28, %c0_29] : memref<128x128xbf16, #tpu.memory_space<vmem>>, vector<128x128xbf16>
    %cst_30 = arith.constant dense<0.000000e+00> : vector<8x128xf32>
    %59 = tpu.matmul %57, %58, %cst_30 {dimension_numbers = #tpu.dot_dimension_numbers<[1], [0], [0], [1], [0, 0, 1, 1], [], []>} : vector<8x128xbf16>, vector<128x128xbf16>, vector<8x128xf32> -> vector<8x128xf32>
    %c0_31 = arith.constant 0 : index
    %c0_32 = arith.constant 0 : index
    %60 = vector.load %arg10[%c0_31, %c0_32] : memref<1x128xf32, #tpu.memory_space<vmem>>, vector<1x128xf32>
    %61 = vector.broadcast %60 : vector<1x128xf32> to vector<8x128xf32>
    %62 = arith.addf %59, %61 : vector<8x128xf32>
    %cst_33 = arith.constant 0.000000e+00 : f32
    %63 = vector.broadcast %cst_33 : f32 to vector<8x128xf32>
    %64 = arith.maximumf %62, %63 : vector<8x128xf32>
    %65 = arith.truncf %64 : vector<8x128xf32> to vector<8x128xbf16>
    %c0_34 = arith.constant 0 : index
    %c0_35 = arith.constant 0 : index
    %66 = vector.load %arg11[%c0_34, %c0_35] : memref<128x128xbf16, #tpu.memory_space<vmem>>, vector<128x128xbf16>
    %cst_36 = arith.constant dense<0.000000e+00> : vector<8x128xf32>
    %67 = tpu.matmul %65, %66, %cst_36 {dimension_numbers = #tpu.dot_dimension_numbers<[1], [0], [0], [1], [0, 0, 1, 1], [], []>} : vector<8x128xbf16>, vector<128x128xbf16>, vector<8x128xf32> -> vector<8x128xf32>
    %c0_37 = arith.constant 0 : index
    %c0_38 = arith.constant 0 : index
    %68 = vector.load %arg12[%c0_37, %c0_38] : memref<1x128xf32, #tpu.memory_space<vmem>>, vector<1x128xf32>
    %69 = vector.broadcast %68 : vector<1x128xf32> to vector<8x128xf32>
    %70 = arith.addf %67, %69 : vector<8x128xf32>
    %71 = math.tanh %70 : vector<8x128xf32>
    %c0_39 = arith.constant 0 : index
    %c0_40 = arith.constant 0 : index
    %72 = vector.load %arg13[%c0_39, %c0_40] : memref<8x128xf32, #tpu.memory_space<vmem>>, vector<8x128xf32>
    tpu.vector_store %arg13[%c0_39, %c0_40], %71 {strides = array<i32>} : memref<8x128xf32, #tpu.memory_space<vmem>>, vector<8x128xf32>,
    return
  }
}

</mosaic_0001>

<bundles_post_ra>
// kernel: tpu_custom_call.1
= control target key start
LH: loop header
LB: loop body
LE: loop exit
PB: predicated region body
PF: predicated region fallthrough
CT: control target
= control target key end

     0   :  { %18 = vsyncpa [#allocation3], 0  ;;  %s1082_s0 = inlined_call_operand.hbm [shape: f32[8,32], index: 0, kind: input, shape index: {}]   ;;  %s1083_s1 = inlined_call_operand.hbm [shape: bf16[32,128], index: 1, kind: input, shape index: {}]   ;;  %s1084_s2 = inlined_call_operand.vmem [shape: f32[1,128], index: 2, kind: input, shape index: {}]   ;;  %s1085_s3 = inlined_call_operand.vmem [shape: f32[1,128], index: 3, kind: input, shape index: {}]   ;;  %s1086_s4 = inlined_call_operand.vmem [shape: f32[1,128], index: 4, kind: input, shape index: {}]   ;;  %s1087_s5 = inlined_call_operand.hbm [shape: bf16[128,128], index: 5, kind: input, shape index: {}]   ;;  %s1088_s6 = inlined_call_operand.vmem [shape: f32[1,128], index: 6, kind: input, shape index: {}]   ;;  %s1089_s7 = inlined_call_operand.hbm [shape: bf16[128,128], index: 7, kind: input, shape index: {}]   ;;  %s1090_s8 = inlined_call_operand.vmem [shape: f32[1,128], index: 8, kind: input, shape index: {}]   ;;  %s1091_s9 = inlined_call_operand.hbm [shape: bf16[128,128], index: 9, kind: input, shape index: {}]   ;;  %s1092_s10 = inlined_call_operand.vmem [shape: f32[1,128], index: 10, kind: input, shape index: {}]   ;;  %s1093_s11 = inlined_call_operand.hbm [shape: bf16[128,128], index: 11, kind: input, shape index: {}]   ;;  %s1094_s12 = inlined_call_operand.vmem [shape: f32[1,128], index: 12, kind: input, shape index: {}]   ;;  %s1095_s13 = inlined_call_operand.hbm [shape: f32[8,128], index: 13, kind: output, shape index: {}]  }
   0x1   :  { %19 = vsyncpa [#allocation6], 0 }
   0x2   :  { %20 = vsyncpa [#allocation9], 0 }
   0x3   :  { %21 = vsyncpa [#allocation12], 0  ;;  %s38_s27 = sshll.u32 %s1083_s1, 4  ;;  %s39_s27 = int_to_ptr.hbm [resolvable:$true] %s38_s27 }
   0x4   :  { %22 = vsyncpa [#allocation4], 0  ;;  %s946_s28 = smov [#allocation5]   ;;  %s72_s15 = sshll.u32 %s1089_s7, 4  ;;  %s73_s15 = int_to_ptr.hbm [resolvable:$true] %s72_s15 }
   0x5   :  { %s40_s29 = sshll.u32 %s946_s28, 4  ;;  %s947_s16 = smov 64   ;;  %s41_s29 = int_to_ptr.vmem [resolvable:$true] %s40_s29 }
   0x6   :  { %s948_s17 = smov 4   ;;  %s949_s18 = smov [#allocation8]  }
   0x7   :  { %46 = dma.hbm_to_vmem [thread:$0]  %s39_s27, 256, %s41_s29, [#allocation6], %s947_s16, %s947_s16, %s948_s17  }
   0x8   :  { %s74_s19 = sshll.u32 %s949_s18, 4  ;;  %s28_s21 = sshll.u32 %s1082_s0, 4  ;;  %s75_s19 = int_to_ptr.vmem [resolvable:$true] %s74_s19  ;;  %s29_s21 = int_to_ptr.hbm [resolvable:$true] %s28_s21 }
   0x9   :  { %80 = dma.hbm_to_vmem [thread:$0]  %s73_s15, 1024, %s75_s19, [#allocation9], %s947_s16, %s947_s16, %s948_s17  }
   0xa   :  { %s57_s23 = sshll.u32 %s1087_s5, 4  ;;  %s950_s24 = smov [#allocation2]   ;;  %s58_s23 = int_to_ptr.hbm [resolvable:$true] %s57_s23 }
   0xb   :  { %s30_s25 = sshll.u32 %s950_s24, 4  ;;  %s951_s26 = smov [#allocation7]   ;;  %s31_s25 = int_to_ptr.vmem [resolvable:$true] %s30_s25 }
   0xc   :  { %33 = dma.hbm_to_vmem [thread:$0]  %s29_s21, 128, %s31_s25, [#allocation3]  }
   0xd   :  { %s59_s27 = sshll.u32 %s951_s26, 4  ;;  %s87_s0 = sshll.u32 %s1091_s9, 4  ;;  %s60_s27 = int_to_ptr.vmem [resolvable:$true] %s59_s27  ;;  %s88_s0 = int_to_ptr.hbm [resolvable:$true] %s87_s0 }
   0xe   :  { %65 = dma.hbm_to_vmem [thread:$0]  %s58_s23, 1024, %s60_s27, [#allocation6], %s947_s16, %s947_s16, %s948_s17  }
   0xf   :  { %s102_s5 = sshll.u32 %s1093_s11, 4  ;;  %s952_s15 = smov [#allocation10]   ;;  %s103_s5 = int_to_ptr.hbm [resolvable:$true] %s102_s5 }
  0x10   :  { %s89_s18 = sshll.u32 %s952_s15, 4  ;;  %s953_s19 = smov [#allocation11]   ;;  %s90_s18 = int_to_ptr.vmem [resolvable:$true] %s89_s18 }
  0x11   :  { %95 = dma.hbm_to_vmem [thread:$0]  %s88_s0, 1024, %s90_s18, [#allocation9], %s947_s16, %s947_s16, %s948_s17  }
  0x12   :  { %s104_s9 = sshll.u32 %s953_s19, 4  ;;  %s105_s9 = int_to_ptr.vmem [resolvable:$true] %s104_s9 }
  0x13   :  { %110 = dma.hbm_to_vmem [thread:$0]  %s103_s5, 1024, %s105_s9, [#allocation12], %s947_s16, %s947_s16, %s948_s17  }
  0x14   :  { %936 = dma.done.wait [#allocation3], 128  }
  0x15   :  { %937 = vsyncadd [#allocation3], 4294967168 }
  0x16   :  { %938 = dma.done.wait [#allocation6], 1280  }
  0x17   :  { %939 = vsyncadd [#allocation6], 4294966016 }
  0x18   :  { %940 = dma.done.wait [#allocation9], 2048  }
  0x19   :  { %941 = vsyncadd [#allocation9], 4294965248 }
  0x1a   :  { %942 = dma.done.wait [#allocation12], 1024  }
  0x1b   :  { %943 = vsyncadd [#allocation12], 4294966272  ;;  %v716_v0 = vld [vmem:[#allocation5 + $0x8] sm:$0xff]  ;;  %v715_v1 = vld [vmem:[#allocation5] sm:$0xff]  ;;  %vm160_vm0 = vcmask 261120   ;;  %s954_s24 = smov [#allocation13]  }
  0x1c   :  { %v138_v2 = vld [vmem:[#allocation2] sm:$0xff]  ;;  %170 = vmatpush.bf16.msra.mxu0 %v716_v0  ;;  %v724_v4 = vld [vmem:[#allocation7 + $0x38] sm:$0xff]  ;;  %v723_v5 = vld [vmem:[#allocation7 + $0x30] sm:$0xff]  ;;  %s563_s25 = sshll.u32 %s954_s24, 4  ;;  %s565_s28 = sshll.u32 %s1095_s13, 4  ;;  %s564_s25 = int_to_ptr.vmem [resolvable:$true] %s563_s25  ;;  %s566_s28 = int_to_ptr.hbm [resolvable:$true] %s565_s28 }
  0x1d   :  { %v139_v3 = vpack.c.bf16 %v138_v2, %v138_v2  ;;  %294 = vmatpush.bf16.msra.mxu1 %v724_v4  ;;  %v722_v6 = vld [vmem:[#allocation7 + $0x28] sm:$0xff]  ;;  %v721_v7 = vld [vmem:[#allocation7 + $0x20] sm:$0xff]  ;;  %v720_v9 = vld [vmem:[#allocation7 + $0x18] sm:$0xff] }
  0x1e   :  { %v758_v8 = vld [vmem:[%s1084_s2] ss:$0 sm:$0xff]  ;;  %v719_v12 = vld [vmem:[#allocation7 + $0x10] sm:$0xff]  ;;  %v717_v22 = vld [vmem:[#allocation7] sm:$0xff] }
  0x1f   :  { %v718_v16 = vld [vmem:[#allocation7 + $0x8] sm:$0xff]  ;;  %v732_v35 = vld [vmem:[#allocation8 + $0x38] sm:$0xff]  ;;  %v731_v37 = vld [vmem:[#allocation8 + $0x30] sm:$0xff] }
  0x20   :  { %171 = vmatpush.bf16.msra.mxu0 %v715_v1  ;;  %377 = vmatpush.bf16.msra.mxu2 %v732_v35  ;;  %v730_v38 = vld [vmem:[#allocation8 + $0x28] sm:$0xff]  ;;  %v729_v40 = vld [vmem:[#allocation8 + $0x20] sm:$0xff]  ;;  %v728_v43 = vld [vmem:[#allocation8 + $0x18] sm:$0xff] }
  0x21   :  { %295 = vmatpush.bf16.msra.mxu1 %v723_v5  ;;  %v727_v46 = vld [vmem:[#allocation8 + $0x10] sm:$0xff]  ;;  %v202_v47 = vld [vmem:[%s1085_s3] sm:$0x1]  ;;  %v725_v58 = vld [vmem:[#allocation8] sm:$0xff] }
  0x22   :  { %v759_v53 = vld [vmem:[%s1086_s4] ss:$0 sm:$0xff]  ;;  %v740_v59 = vld [vmem:[#allocation10 + $0x38] sm:$0xff]  ;;  %v739_v60 = vld [vmem:[#allocation10 + $0x30] sm:$0xff] }
  0x23   :  { %586 = vmatmul.msk.bf16.vlgmr.msra.gmra.mxu0 %vm160_vm0, %v139_v3  ;;  %v726_v57 = vld [vmem:[#allocation8 + $0x8] sm:$0xff]  ;;  %460 = vmatpush.bf16.msra.mxu3 %v740_v59  ;;  %v737_v62 = vld [vmem:[#allocation10 + $0x20] sm:$0xff]  ;;  %v736_v63 = vld [vmem:[#allocation10 + $0x18] sm:$0xff] }
  0x24   :  { %378 = vmatpush.bf16.msra.mxu2 %v731_v37  ;;  %v738_v61 = vld [vmem:[#allocation10 + $0x28] sm:$0xff]  ;;  %v735_v0 = vld [vmem:[#allocation10 + $0x10] sm:$0xff] }
  0x25   :  { %296 = vmatpush.bf16.msra.mxu1 %v722_v6  ;;  %v760_v1 = vld [vmem:[%s1088_s6] ss:$0 sm:$0xff] }
  0x27   :  { %461 = vmatpush.bf16.msra.mxu3 %v739_v60 }
  0x28   :  { %379 = vmatpush.bf16.msra.mxu2 %v730_v38 }
  0x29   :  { %297 = vmatpush.bf16.msra.mxu1 %v721_v7  ;;  %v734_v7 = vld [vmem:[#allocation10 + $0x8] sm:$0xff] }
  0x2b   :  { %462 = vmatpush.bf16.msra.mxu3 %v738_v61 }
  0x2c   :  { %380 = vmatpush.bf16.msra.mxu2 %v729_v40 }
  0x2d   :  { %298 = vmatpush.bf16.msra.mxu1 %v720_v9  ;;  %v748_v9 = vld [vmem:[#allocation11 + $0x38] sm:$0xff] }
  0x2e   :  { %543 = vmatpush.bf16.msrb.mxu0 %v748_v9 }
  0x2f   :  { %463 = vmatpush.bf16.msra.mxu3 %v737_v62 }
  0x30   :  { %381 = vmatpush.bf16.msra.mxu2 %v728_v43 }
  0x31   :  { %299 = vmatpush.bf16.msra.mxu1 %v719_v12  ;;  %v745_v12 = vld [vmem:[#allocation11 + $0x20] sm:$0xff] }
  0x33   :  { %464 = vmatpush.bf16.msra.mxu3 %v736_v63 }
  0x34   :  { %382 = vmatpush.bf16.msra.mxu2 %v727_v46 }
  0x35   :  { %300 = vmatpush.bf16.msra.mxu1 %v718_v16 }
  0x37   :  { %465 = vmatpush.bf16.msra.mxu3 %v735_v0 }
  0x38   :  { %383 = vmatpush.bf16.msra.mxu2 %v726_v57 }
  0x39   :  { %301 = vmatpush.bf16.msra.mxu1 %v717_v22  ;;  %v741_v22 = vld [vmem:[#allocation11] sm:$0xff] }
  0x3b   :  { %466 = vmatpush.bf16.msra.mxu3 %v734_v7 }
  0x3c   :  { %384 = vmatpush.bf16.msra.mxu2 %v725_v58 }
  0xa0   :  { %v173_v10 = vpop.f32.mrf.mxu0 }
  0xa1   :  { %v174_v11 = vadd.f32 %v758_v8, %v173_v10  ;;  %v733_v8 = vld [vmem:[#allocation10] sm:$0xff]  ;;  %v747_v10 = vld [vmem:[#allocation11 + $0x30] sm:$0xff] }
  0xa2   :  { %467 = vmatpush.bf16.msra.mxu3 %v733_v8  ;;  %544 = vmatpush.bf16.msrb.mxu0 %v747_v10 }
  0xa3   :  { %v177_v13 = vmax.f32 %v174_v11, 0.0  ;;  %v746_v11 = vld [vmem:[#allocation11 + $0x28] sm:$0xff] }
  0xa5   :  { %v184_v14 = vrot.slane %v177_v13, 4  ;;  %v191_v15 = vmul.f32 %v177_v13, %v177_v13 }
  0xa6   :  { %545 = vmatpush.bf16.msrb.mxu0 %v746_v11 }
  0xa7   :  { %v185_v17 = vadd.f32 %v184_v14, %v177_v13  ;;  %v192_v18 = vrot.slane %v191_v15, 4  ;;  %v743_v14 = vld [vmem:[#allocation11 + $0x10] sm:$0xff] }
  0xa8   :  { %v175_v19 = vpop.f32.mrf.mxu0 }
  0xa9   :  { %v186_v20 = vrot.slane %v185_v17, 2  ;;  %v193_v21 = vadd.f32 %v192_v18, %v191_v15  ;;  %v761_v15 = vld [vmem:[%s1090_s8] ss:$0 sm:$0xff] }
  0xaa   :  { %546 = vmatpush.bf16.msrb.mxu0 %v745_v12 }
  0xab   :  { %v194_v23 = vrot.slane %v193_v21, 2  ;;  %v187_v24 = vadd.f32 %v186_v20, %v185_v17 }
  0xad   :  { %v195_v25 = vadd.f32 %v194_v23, %v193_v21  ;;  %v188_v26 = vrot.slane %v187_v24, 1  ;;  %v742_v21 = vld [vmem:[#allocation11 + $0x8] sm:$0xff] }
  0xae   :  { %v762_v23 = vld [vmem:[%s1092_s10] ss:$0 sm:$0xff] }
  0xaf   :  { %v196_v27 = vrot.slane %v195_v25, 1  ;;  %v189_v28 = vadd.f32 %v188_v26, %v187_v24 }
  0xb1   :  { %v190_v29 = vmul.f32 0.125, %v189_v28  ;;  %v197_v30 = vadd.f32 %v196_v27, %v195_v25 }
  0xb3   :  { %v198_v31 = vmul.f32 0.125, %v197_v30  ;;  %v199_v32 = vmul.f32 %v190_v29, %v190_v29  ;;  %v215_v51 = vsub.f32 %v177_v13, %v190_v29  ;;  %v744_v13 = vld [vmem:[#allocation11 + $0x18] sm:$0xff]  ;;  %v763_v29 = vld [vmem:[%s1094_s12] ss:$0 sm:$0xff] }
  0xb4   :  { %547 = vmatpush.bf16.msrb.mxu0 %v744_v13 }
  0xb5   :  { %v200_v33 = vsub.f32 %v198_v31, %v199_v32 }
  0xb7   :  { %v201_v34 = vmax.f32 %v200_v33, 0.0 }
  0xb8   :  { %548 = vmatpush.bf16.msrb.mxu0 %v743_v14 }
  0xb9   :  { %v203_v36 = vadd.f32 1e-05, %v201_v34 }
  0xbb   :  { %764 = vrsqrt.f32 %v203_v36  ;;  %vm210_vm2 = vweird.f32 %v203_v36 }
  0xbc   :  { %549 = vmatpush.bf16.msrb.mxu0 %v742_v21 }
  0xc0   :  { %550 = vmatpush.bf16.msrb.mxu0 %v741_v22 }
  0xc1   :  { %v765_v39 = vpop.eup %764 }
  0xc2   :  { %v205_v41 = vmul.f32 %v765_v39, %v203_v36  ;;  %vm211_vm1 = vweird.f32 %v765_v39 }
  0xc3   :  { %vm212_vm3 = vmor %vm210_vm2, %vm211_vm1 }
  0xc4   :  { %v206_v42 = vmul.f32 %v765_v39, %v205_v41 }
  0xc6   :  { %v207_v44 = vmul.f32 0.5, %v206_v42 }
  0xc8   :  { %v208_v45 = vsub.f32 1.5, %v207_v44 }
  0xca   :  { %v209_v48 = vmul.f32 %v765_v39, %v208_v45 }
  0xcc   :  { %v213_v49 = vsel %vm212_vm3, %v765_v39, %v209_v48 }
  0xcd   :  { %v214_v50 = vmul.f32 %v213_v49, %v202_v47 }
  0xcf   :  { %v217_v52 = vperm.slane %v214_v50, 0 }
  0xd1   :  { %v219_v54 = vmul.f32 %v217_v52, %v215_v51 }
  0xd3   :  { %v224_v55 = vadd.f32 %v759_v53, %v219_v54 }
  0xd5   :  { %v225_v56 = vpack.c.bf16 %v224_v55, %v224_v55 }
  0xd7   :  { %302 = vmatmul.bf16.vlgmr.msra.gmra.mxu1 %v225_v56 }
 0x154   :  { %v303_v2 = vpop.f32.mrf.mxu1 }
 0x155   :  { %v304_v3 = vadd.f32 %v760_v1, %v303_v2 }
 0x157   :  { %v307_v4 = vmax.f32 %v304_v3, 0.0 }
 0x159   :  { %v308_v5 = vpack.c.bf16 %v307_v4, %v307_v4 }
 0x15b   :  { %385 = vmatmul.bf16.vlgmr.msra.gmra.mxu2 %v308_v5 }
 0x15c   :  { %v305_v6 = vpop.f32.mrf.mxu1 }
 0x1de   :  { %v386_v16 = vpop.f32.mrf.mxu2 }
 0x1df   :  { %v387_v17 = vadd.f32 %v761_v15, %v386_v16 }
 0x1e1   :  { %v390_v18 = vmax.f32 %v387_v17, 0.0 }
 0x1e3   :  { %v391_v19 = vpack.c.bf16 %v390_v18, %v390_v18 }
 0x1e5   :  { %468 = vmatmul.bf16.vlgmr.msra.gmra.mxu3 %v391_v19 }
 0x1e6   :  { %v388_v20 = vpop.f32.mrf.mxu2 }
 0x268   :  { %v469_v24 = vpop.f32.mrf.mxu3 }
 0x269   :  { %v470_v25 = vadd.f32 %v762_v23, %v469_v24 }
 0x26b   :  { %v473_v26 = vmax.f32 %v470_v25, 0.0 }
 0x26d   :  { %v474_v27 = vpack.c.bf16 %v473_v26, %v473_v26 }
 0x26f   :  { %551 = vmatmul.bf16.vlgmr.msrb.gmra.mxu0 %v474_v27 }
 0x270   :  { %v471_v28 = vpop.f32.mrf.mxu3 }
 0x2ec   :  { %v552_v30 = vpop.f32.mrf.mxu0 }
 0x2ed   :  { %v553_v31 = vadd.f32 %v763_v29, %v552_v30 }
 0x2ef   :  { %766 = vtanh.f32 %v553_v31 }
 0x2f4   :  { %v554_v32 = vpop.f32.mrf.mxu0 }
 0x2f5   :  { %v767_v33 = vpop.eup %766 }
 0x2f6   :  { %557 = vst [vmem:[#allocation13] sm:$0xff] %v767_v33 }
 0x2f7   :  { %568 = dma.vmem_to_hbm [thread:$0]  %s564_s25, 128, %s566_s28, [#allocation4]  }
 0x2f8   :  { %944 = dma.done.wait [#allocation4], 128  }
 0x2f9   :  { %945 = vsyncadd [#allocation4], 4294967168 }
 0x2fa   :  { %573 = vsyncpa [#allocation3], 1 }
 0x2fb   :  { %574 = vsyncpa [#allocation6], 1 }
 0x2fc   :  { %575 = vsyncpa [#allocation9], 1 }
 0x2fd   :  { %576 = vsyncpa [#allocation12], 1 }
 0x2fe   :  { %577 = vsyncpa [#allocation4], 1 }

</bundles_post_ra>
